<compile_context>
chip_gen: v7x
topology: tpu7x:2x2x1
jax: 0.10.0
libtpu: 0.0.40
codegen_flags: <defaults>
</compile_context>

<pallas_src>
import jax
import jax.numpy as jnp
from jax import lax
from jax.experimental import pallas as pl
from jax.experimental.pallas import tpu as pltpu


# ----------------------------------------------------------------------------------
# Streaming kernel: read (row_tile, v_tile) blocks of x, select the target column.
# ----------------------------------------------------------------------------------
def _lm_stream_kernel(x_ref, tgt_ref, msk_ref, out_ref, num_acc):
    ri = pl.program_id(0)
    vi = pl.program_id(1)

    @pl.when(jnp.logical_and(ri == 0, vi == 0))
    def _init():
        num_acc[...] = jnp.zeros_like(num_acc)

    x = x_ref[...]                                   # (row_tile, v_tile) native dtype
    rows, vt = x.shape
    col0 = vi * vt
    # (1, v_tile) iota broadcast against (row_tile, 1) targets -> no (rows, V) iota.
    col_ids = col0 + lax.broadcasted_iota(jnp.int32, (1, vt), 1)
    sel = jnp.where(col_ids == tgt_ref[...], x, jnp.zeros((), x.dtype))
    gathered = jnp.sum(sel, axis=1, keepdims=True).astype(jnp.float32)   # (rows, 1)

    # Only the v-chunk containing the target contributes a non-zero value, so summing
    # the per-chunk partial gathers across the V grid axis is exact.
    num_acc[...] += -gathered * msk_ref[...]

    @pl.when(jnp.logical_and(ri == pl.num_programs(0) - 1,
                             vi == pl.num_programs(1) - 1))
    def _finalize():
        total = jnp.sum(num_acc[...])
        sub = lax.broadcasted_iota(jnp.int32, (8, 128), 0)
        lane = lax.broadcasted_iota(jnp.int32, (8, 128), 1)
        out_ref[...] = jnp.where((sub == 0) & (lane == 0), total, 0.0)


# ----------------------------------------------------------------------------------
# Gather kernel: x stays in HBM; per row, DMA only the 128-lane chunk holding the
# target (chunk start indices scalar-prefetched into SMEM).
# ----------------------------------------------------------------------------------
def _lm_gather_kernel(chunk_ref, lane_ref, msk_ref, x_hbm, out_ref,
                      gbuf, sem, num_acc):
    step = pl.program_id(0)
    row_tile, lane_chunk = gbuf.shape
    n_rows = x_hbm.shape[0]
    row0 = step * row_tile

    @pl.when(step == 0)
    def _init():
        num_acc[...] = jnp.zeros_like(num_acc)

    def _issue(r, carry):
        row = row0 + r
        src_row = jnp.minimum(row, n_rows - 1)       # padded rows: read a valid row
        start = chunk_ref[row]                       # SMEM scalar (target // 128 * 128)
        pltpu.make_async_copy(
            x_hbm.at[pl.ds(src_row, 1), pl.ds(start, lane_chunk)],
            gbuf.at[pl.ds(r, 1), :],
            sem,
        ).start()
        return carry

    lax.fori_loop(0, row_tile, _issue, 0)

    def _wait(r, carry):
        # All copies have identical (1, lane_chunk) shape, so a same-shaped dummy
        # descriptor waits for exactly one of them.
        pltpu.make_async_copy(
            x_hbm.at[pl.ds(0, 1), pl.ds(0, lane_chunk)],
            gbuf.at[pl.ds(0, 1), :],
            sem,
        ).wait()
        return carry

    lax.fori_loop(0, row_tile, _wait, 0)

    g = gbuf[...]                                    # (row_tile, lane_chunk)
    lane_ids = lax.broadcasted_iota(jnp.int32, (1, lane_chunk), 1)
    sel = jnp.where(lane_ids == lane_ref[...], g, jnp.zeros((), g.dtype))
    gathered = jnp.sum(sel, axis=1, keepdims=True).astype(jnp.float32)   # (rows, 1)

    num_acc[...] += -gathered * msk_ref[...]

    @pl.when(step == pl.num_programs(0) - 1)
    def _finalize():
        total = jnp.sum(num_acc[...])
        sub = lax.broadcasted_iota(jnp.int32, (8, 128), 0)
        lane = lax.broadcasted_iota(jnp.int32, (8, 128), 1)
        out_ref[...] = jnp.where((sub == 0) & (lane == 0), total, 0.0)


# ----------------------------------------------------------------------------------
# Wrappers
# ----------------------------------------------------------------------------------
def _round_up(x, m):
    return (x + m - 1) // m * m


def _stream_numerator(x, tgt, msk, *, max_block_bytes):
    N, V = x.shape
    itemsize = jnp.dtype(x.dtype).itemsize
    sub = max(8, 32 // itemsize)                     # 8 f32, 16 bf16, 32 int8/fp8

    # V tiling: full V if a sublane-pack of rows fits the byte budget, else a
    # 128-aligned chunk (bounds VMEM independent of vocab size).
    budget_cols = max(128, (max_block_bytes // (sub * itemsize)) // 128 * 128)
    if V <= budget_cols:
        v_tile, V_pad = V, V
    else:
        V128 = _round_up(V, 128)
        n_chunks = pl.cdiv(V128, budget_cols)
        v_tile = _round_up(pl.cdiv(V128, n_chunks), 128)
        V_pad = _round_up(V, v_tile)

    # Row tile from the byte budget, rounded to the sublane pack; cap keeps the
    # lane-sparse (row_tile, 1) companions small.
    rows_budget = max(sub, min(2048, (max_block_bytes // (v_tile * itemsize)) // sub * sub))
    row_tile = int(min(rows_budget, _round_up(N, sub)))
    N_pad = _round_up(N, row_tile)

    if N_pad != N or V_pad != V:
        x = jnp.pad(x, ((0, N_pad - N), (0, V_pad - V)))
    tgt2 = jnp.pad(tgt, (0, N_pad - N)).reshape(N_pad, 1)
    msk2 = jnp.pad(msk, (0, N_pad - N)).reshape(N_pad, 1)

    partial = pl.pallas_call(
        _lm_stream_kernel,
        out_shape=jax.ShapeDtypeStruct((8, 128), jnp.float32),
        grid_spec=pltpu.PrefetchScalarGridSpec(
            num_scalar_prefetch=0,
            grid=(N_pad // row_tile, V_pad // v_tile),
            in_specs=[
                pl.BlockSpec((row_tile, v_tile), lambda i, j: (i, j)),
                pl.BlockSpec((row_tile, 1), lambda i, j: (i, 0)),
                pl.BlockSpec((row_tile, 1), lambda i, j: (i, 0)),
            ],
            out_specs=pl.BlockSpec((8, 128), lambda i, j: (0, 0)),
            scratch_shapes=[pltpu.VMEM((row_tile, 1), jnp.float32)],
        ),
        compiler_params=pltpu.CompilerParams(
            dimension_semantics=("arbitrary", "arbitrary"),
            vmem_limit_bytes=32 * 1024 * 1024,
        ),
    )(x, tgt2, msk2)
    return partial[0, 0]


def _gather_numerator(x, tgt, msk, *, lane_chunk=128, max_row_tile=256):
    N, V = x.shape

    # Chunk start (clamped so the 128-lane window stays inside V) and in-chunk offset.
    chunk_start = jnp.minimum((tgt // lane_chunk) * lane_chunk,
                              V - lane_chunk).astype(jnp.int32)
    lane_off = (tgt - chunk_start).astype(jnp.int32)

    row_tile = int(min(max_row_tile, _round_up(N, 8)))
    row_tile = max(8, row_tile // 8 * 8)
    N_pad = _round_up(N, row_tile)
    pad = N_pad - N

    chunk_start = jnp.pad(chunk_start, (0, pad))
    lane2 = jnp.pad(lane_off, (0, pad)).reshape(N_pad, 1)
    msk2 = jnp.pad(msk, (0, pad)).reshape(N_pad, 1)

    partial = pl.pallas_call(
        _lm_gather_kernel,
        out_shape=jax.ShapeDtypeStruct((8, 128), jnp.float32),
        grid_spec=pltpu.PrefetchScalarGridSpec(
            num_scalar_prefetch=1,                     # chunk_start -> SMEM
            grid=(N_pad // row_tile,),
            in_specs=[
                pl.BlockSpec((row_tile, 1), lambda i, c: (i, 0)),   # lane offsets
                pl.BlockSpec((row_tile, 1), lambda i, c: (i, 0)),   # mask
                pl.BlockSpec(memory_space=pl.ANY),                  # x stays in HBM
            ],
            out_specs=pl.BlockSpec((8, 128), lambda i, c: (0, 0)),
            scratch_shapes=[
                pltpu.VMEM((row_tile, lane_chunk), x.dtype),        # gathered chunks
                pltpu.SemaphoreType.DMA,                            # shared copy sem
                pltpu.VMEM((row_tile, 1), jnp.float32),             # numerator acc
            ],
        ),
        compiler_params=pltpu.CompilerParams(
            dimension_semantics=("arbitrary",),
            vmem_limit_bytes=32 * 1024 * 1024,
        ),
    )(chunk_start, lane2, msk2, x)
    return partial[0, 0]


def language_model_criterion(inp, target, mask, *, use_gather=None,
                             max_block_bytes=8 * 1024 * 1024,
                             gather_min_vocab=2048):
    """inp: (B, T, V) float, target: (B, T) int, mask: (B, T) float -> scalar f32."""
    B, T, V = inp.shape
    N = B * T

    x = inp.reshape(N, V)
    tgt = target.reshape(N).astype(jnp.int32)
    msk = mask.reshape(N).astype(jnp.float32)

    # Denominator in the wrapper (one fused XLA reduction; drops the den_acc scratch).
    den = jnp.sum(msk)

    if use_gather is None:
        use_gather = V >= gather_min_vocab
    if V < 128:                       # gather window needs at least one 128-lane chunk
        use_gather = False

    if use_gather:
        num = _gather_numerator(x, tgt, msk)
    else:
        num = _stream_numerator(x, tgt, msk, max_block_bytes=max_block_bytes)
    return num / den


def _reference(inp, target, mask):
    B, T, V = inp.shape
    x = inp.reshape(-1, V)
    t = target.reshape(-1)
    m = mask.reshape(-1)
    gathered = jnp.take_along_axis(x, t[:, None], axis=1)[:, 0]
    return jnp.sum(-gathered * m) / jnp.sum(m)


if __name__ == "__main__":
    key = jax.random.PRNGKey(0)
    k1, k2 = jax.random.split(key, 2)

    B, T, V = 2, 8, 512                      # N = 16 rows, vocab on the lane axis
    logits = jax.random.normal(k1, (B, T, V), dtype=jnp.float32)
    logprobs = jax.nn.log_softmax(logits, axis=-1)
    target = jax.random.randint(k2, (B, T), 0, V, dtype=jnp.int32)
    # deterministic 0/1 mask (mask out the last 2 tokens of each sequence)
    mask = (jnp.arange(T)[None, :] < (T - 2)).astype(jnp.float32)
    mask = jnp.broadcast_to(mask, (B, T))

    ref = jax.block_until_ready(_reference(logprobs, target, mask))

    # Streaming path (auto choice for small V).
    loss_stream = jax.block_until_ready(
        language_model_criterion(logprobs, target, mask, use_gather=False))
    assert jnp.allclose(loss_stream, ref, atol=1e-5, rtol=1e-5), (loss_stream, ref)

    # Gather path (auto choice for large V) exercised explicitly as well.
    loss_gather = jax.block_until_ready(
        language_model_criterion(logprobs, target, mask, use_gather=True))
    assert jnp.allclose(loss_gather, ref, atol=1e-5, rtol=1e-5), (loss_gather, ref)

    print("KERNEL_OK")
</pallas_src>

<mosaic_0001>
module attributes {stable_mosaic.version = 11 : i64} {
  func.func @_lm_stream_kernel(%arg0: i32, %arg1: i32, %arg2: memref<16x512xf32, #tpu.memory_space<vmem>>, %arg3: memref<16x1xi32, #tpu.memory_space<vmem>>, %arg4: memref<16x1xf32, #tpu.memory_space<vmem>>, %arg5: memref<8x128xf32, #tpu.memory_space<vmem>>, %arg6: memref<16x1xf32, #tpu.memory_space<vmem>>) attributes {dimension_semantics = [#tpu.dimension_semantics<arbitrary>, #tpu.dimension_semantics<arbitrary>], iteration_bounds = array<i64: 1, 1>, scalar_prefetch = 0 : i64, scratch_operands = 1 : i64, tpu.core_type = #tpu.core_type<tc>, window_params = [{transform_indices = @transform_0, window_bounds = array<i64: 16, 512>}, {transform_indices = @transform_1, window_bounds = array<i64: 16, 1>}, {transform_indices = @transform_2, window_bounds = array<i64: 16, 1>}, {pipeline_mode = #tpu.pipeline_mode<synchronous>, transform_indices = @transform_3, window_bounds = array<i64: 8, 128>}]} {
    %c0_i32 = arith.constant 0 : i32
    %0 = arith.cmpi eq, %arg0, %c0_i32 : i32
    %c0_i32_0 = arith.constant 0 : i32
    %1 = arith.cmpi eq, %arg1, %c0_i32_0 : i32
    %2 = arith.andi %0, %1 : i1
    %3 = arith.extui %2 : i1 to i32
    %c0_i32_1 = arith.constant 0 : i32
    %4 = arith.cmpi ne, %3, %c0_i32_1 : i32
    scf.if %4 {
      %cst_16 = arith.constant 0.000000e+00 : f32
      %30 = vector.broadcast %cst_16 : f32 to vector<16x1xf32>
      %c0_17 = arith.constant 0 : index
      %c0_18 = arith.constant 0 : index
      %31 = vector.load %arg6[%c0_17, %c0_18] : memref<16x1xf32, #tpu.memory_space<vmem>>, vector<16x1xf32>
      tpu.vector_store %arg6[%c0_17, %c0_18], %30 {strides = array<i32>} : memref<16x1xf32, #tpu.memory_space<vmem>>, vector<16x1xf32>,
    } else {
    }
    %c0 = arith.constant 0 : index
    %c0_2 = arith.constant 0 : index
    %5 = vector.load %arg2[%c0, %c0_2] : memref<16x512xf32, #tpu.memory_space<vmem>>, vector<16x512xf32>
    %c512_i32 = arith.constant 512 : i32
    %6 = arith.muli %arg1, %c512_i32 : i32
    %7 = tpu.iota {dimensions = array<i32: 1>} : vector<1x512xi32>
    %8 = vector.broadcast %6 : i32 to vector<1x512xi32>
    %9 = arith.addi %8, %7 : vector<1x512xi32>
    %c0_3 = arith.constant 0 : index
    %c0_4 = arith.constant 0 : index
    %10 = vector.load %arg3[%c0_3, %c0_4] : memref<16x1xi32, #tpu.memory_space<vmem>>, vector<16x1xi32>
    %11 = vector.broadcast %9 : vector<1x512xi32> to vector<16x512xi32>
    %12 = vector.broadcast %10 : vector<16x1xi32> to vector<16x512xi32>
    %13 = arith.cmpi eq, %11, %12 : vector<16x512xi32>
    %cst = arith.constant 0.000000e+00 : f32
    %14 = vector.broadcast %cst : f32 to vector<16x512xf32>
    %15 = arith.select %13, %5, %14 : vector<16x512xi1>, vector<16x512xf32>
    %cst_5 = arith.constant dense<0.000000e+00> : vector<16xf32>
    %16 = vector.multi_reduction <add>, %15, %cst_5 [1] : vector<16x512xf32> to vector<16xf32>
    %17 = vector.shape_cast %16 : vector<16xf32> to vector<16x1xf32>
    %c0_6 = arith.constant 0 : index
    %c0_7 = arith.constant 0 : index
    %18 = vector.load %arg6[%c0_6, %c0_7] : memref<16x1xf32, #tpu.memory_space<vmem>>, vector<16x1xf32>
    %cst_8 = arith.constant 0.000000e+00 : f32
    %19 = vector.broadcast %cst_8 : f32 to vector<16x1xf32>
    %20 = arith.subf %19, %17 : vector<16x1xf32>
    %c0_9 = arith.constant 0 : index
    %c0_10 = arith.constant 0 : index
    %21 = vector.load %arg4[%c0_9, %c0_10] : memref<16x1xf32, #tpu.memory_space<vmem>>, vector<16x1xf32>
    %22 = arith.mulf %20, %21 : vector<16x1xf32>
    %23 = arith.addf %18, %22 : vector<16x1xf32>
    %c0_11 = arith.constant 0 : index
    %c0_12 = arith.constant 0 : index
    %24 = vector.load %arg6[%c0_11, %c0_12] : memref<16x1xf32, #tpu.memory_space<vmem>>, vector<16x1xf32>
    tpu.vector_store %arg6[%c0_11, %c0_12], %23 {strides = array<i32>} : memref<16x1xf32, #tpu.memory_space<vmem>>, vector<16x1xf32>,
    %c0_i32_13 = arith.constant 0 : i32
    %25 = arith.cmpi eq, %arg0, %c0_i32_13 : i32
    %c0_i32_14 = arith.constant 0 : i32
    %26 = arith.cmpi eq, %arg1, %c0_i32_14 : i32
    %27 = arith.andi %25, %26 : i1
    %28 = arith.extui %27 : i1 to i32
    %c0_i32_15 = arith.constant 0 : i32
    %29 = arith.cmpi ne, %28, %c0_i32_15 : i32
    scf.if %29 {
      %c0_16 = arith.constant 0 : index
      %c0_17 = arith.constant 0 : index
      %30 = vector.load %arg6[%c0_16, %c0_17] : memref<16x1xf32, #tpu.memory_space<vmem>>, vector<16x1xf32>
      %31 = vector.shape_cast %30 : vector<16x1xf32> to vector<1x16x1xf32>
      %cst_18 = arith.constant dense<0.000000e+00> : vector<1xf32>
      %32 = vector.multi_reduction <add>, %31, %cst_18 [1, 2] : vector<1x16x1xf32> to vector<1xf32>
      %33 = vector.shape_cast %32 : vector<1xf32> to vector<1x1x1xf32>
      %34 = vector.extract %33[0, 0, 0] : f32 from vector<1x1x1xf32>
      %35 = tpu.iota {dimensions = array<i32: 0>} : vector<8x128xi32>
      %36 = tpu.iota {dimensions = array<i32: 1>} : vector<8x128xi32>
      %c0_i32_19 = arith.constant 0 : i32
      %37 = vector.broadcast %c0_i32_19 : i32 to vector<8x128xi32>
      %38 = arith.cmpi eq, %35, %37 : vector<8x128xi32>
      %c0_i32_20 = arith.constant 0 : i32
      %39 = vector.broadcast %c0_i32_20 : i32 to vector<8x128xi32>
      %40 = arith.cmpi eq, %36, %39 : vector<8x128xi32>
      %41 = arith.andi %38, %40 : vector<8x128xi1>
      %cst_21 = arith.constant 0.000000e+00 : f32
      %42 = vector.broadcast %34 : f32 to vector<8x128xf32>
      %43 = vector.broadcast %cst_21 : f32 to vector<8x128xf32>
      %44 = arith.select %41, %42, %43 : vector<8x128xi1>, vector<8x128xf32>
      %c0_22 = arith.constant 0 : index
      %c0_23 = arith.constant 0 : index
      %45 = vector.load %arg5[%c0_22, %c0_23] : memref<8x128xf32, #tpu.memory_space<vmem>>, vector<8x128xf32>
      tpu.vector_store %arg5[%c0_22, %c0_23], %44 {strides = array<i32>} : memref<8x128xf32, #tpu.memory_space<vmem>>, vector<8x128xf32>,
    } else {
    }
    return
  }
  func.func @transform_0(%arg0: i32, %arg1: i32) -> (i32, i32) {
    %c0_i32 = arith.constant 0 : i32
    return %arg0, %arg1 : i32, i32
  }
  func.func @transform_1(%arg0: i32, %arg1: i32) -> (i32, i32) {
    %c0_i32 = arith.constant 0 : i32
    %c0_i32_0 = arith.constant 0 : i32
    return %arg0, %c0_i32 : i32, i32
  }
  func.func @transform_2(%arg0: i32, %arg1: i32) -> (i32, i32) {
    %c0_i32 = arith.constant 0 : i32
    %c0_i32_0 = arith.constant 0 : i32
    return %arg0, %c0_i32 : i32, i32
  }
  func.func @transform_3(%arg0: i32, %arg1: i32) -> (i32, i32) {
    %c0_i32 = arith.constant 0 : i32
    %c0_i32_0 = arith.constant 0 : i32
    %c0_i32_1 = arith.constant 0 : i32
    return %c0_i32, %c0_i32_0 : i32, i32
  }
}

</mosaic_0001>

<bundles_post_ra>
// kernel: tpu_custom_call.1
= control target key start
LH: loop header
LB: loop body
LE: loop exit
PB: predicated region body
PF: predicated region fallthrough
CT: control target
= control target key end

     0   :  { %8 = vsyncpa [#allocation4], 0  ;;  %s278_s0 = inlined_call_operand.hbm [shape: f32[16,512], index: 0, kind: input, shape index: {}]   ;;  %s279_s1 = inlined_call_operand.vmem [shape: s32[16,1], index: 1, kind: input, shape index: {}]   ;;  %s280_s2 = inlined_call_operand.vmem [shape: f32[16,1], index: 2, kind: input, shape index: {}]   ;;  %s281_s3 = inlined_call_operand.hbm [shape: f32[8,128], index: 3, kind: output, shape index: {}]  }
   0x1   :  { %9 = vsyncpa [#allocation5], 0  ;;  %s200_s12 = smov [#allocation3]   ;;  %s152_s16 = scalar_lea.hbm %s278_s0, 1024 }
   0x2   :  { %s15_s13 = sshll.u32 %s200_s12, 4  ;;  %p153_p0 = scmp.ne.s32.totalorder %s278_s0, %s152_s16  ;;  %s16_s13 = int_to_ptr.vmem [resolvable:$true] %s15_s13 }
   0x3   :  { %p156_p1 = scmp.lt.u32.totalorder %s152_s16, %s278_s0 }
   0x5   :  { %p158_p2 = pnand %p156_p1, %p153_p0 }
   0x7   :  { %161 = shalt.err (!%p158_p2)
}
   0x8   :  { %s162_s21 = scalar_lea.vmem %s16_s13, 1024  ;;  %p167_p4 = scmp.lt.s32.totalorder %s16_s13, %s16_s13 }
   0x9   :  { %p163_p3 = scmp.ne.s32.totalorder %s16_s13, %s162_s21  ;;  %p168_p5 = scmp.lt.s32.totalorder %s162_s21, %s162_s21 }
   0xb   :  { %p169_p6 = por %p168_p5, %p167_p4 }
   0xd   :  { %p170_p7 = pnand %p169_p6, %p163_p3 }
   0xf   :  { %173 = shalt.err (!%p170_p7)
}
  0x10   :  { %s201_s22 = smov 512   ;;  %s202_s23 = smov 32  }
  0x11   :  { %21 = dma.hbm_to_vmem [thread:$0]  %s278_s0, 1024, %s16_s13, [#allocation4], %s201_s22, %s201_s22, %s202_s23  }
  0x12   :  { %196 = dma.done.wait [#allocation4], 1024  }
  0x13   :  { %197 = vsyncadd [#allocation4], 4294966272  ;;  %v203_v0 = vmov 0   ;;  %v57_v1 = vld [vmem:[%s279_s1] sm:$0xff]  ;;  %v58_v2 = vld [vmem:[%s279_s1 + $0x8] sm:$0xff]  ;;  %vm35_vm0 = vcmask 7168   ;;  %v47_v4 = vlaneseq }
  0x14   :  { %151 = vset.pattern.permute.xlu0 %v203_v0  ;;  %v204_v3 = vmov 0.0   ;;  %v38_v8 = vld [vmem:[#allocation3] sm:$0xff]  ;;  %v39_v9 = vld [vmem:[#allocation3 + $0x8] sm:$0xff]  ;;  %v40_v12 = vld [vmem:[#allocation3 + $0x10] sm:$0xff] }
  0x15   :  { %60 = vperm.xlu0 %151, %v57_v1   ;;  %36 = vst.msk [vmem:[#allocation2] sm:$0xff] %vm35_vm0, %v204_v3  ;;  %37 = vst.msk [vmem:[#allocation2 + $0x8] sm:$0xff] %vm35_vm0, %v204_v3  ;;  %v247_v5 = vand.u32 127, %v47_v4  ;;  %v41_v15 = vld [vmem:[#allocation3 + $0x18] sm:$0xff]  ;;  %v42_v17 = vld [vmem:[#allocation3 + $0x20] sm:$0xff]  ;;  %v121_v57 = vshrl.u32 %v47_v4, 7 }
  0x16   :  { %v43_v18 = vld [vmem:[#allocation3 + $0x28] sm:$0xff]  ;;  %v44_v22 = vld [vmem:[#allocation3 + $0x30] sm:$0xff]  ;;  %v45_v27 = vld [vmem:[#allocation3 + $0x38] sm:$0xff] }
  0x17   :  { %v49_v6 = vadd.s32 128, %v247_v5  ;;  %v50_v7 = vadd.s32 256, %v247_v5  ;;  %v51_v10 = vadd.s32 384, %v247_v5  ;;  %v95_v33 = vld [vmem:[%s280_s2] sm:$0xff]  ;;  %v96_v38 = vld [vmem:[%s280_s2 + $0x8] sm:$0xff]  ;;  %vm122_vm9 = vcmp.eq.s32.totalorder %v121_v57, 0 }
  0x18   :  { %vm123_vm10 = vcmp.eq.s32.totalorder %v247_v5, 0  ;;  %s205_s2 = smov [#allocation6]  }
  0x19   :  { %63 = vperm.xlu0 %151, %v58_v2   ;;  %s134_s5 = sshll.u32 %s205_s2, 4  ;;  %vm124_vm11 = vmand %vm122_vm9, %vm123_vm10  ;;  %s135_s5 = int_to_ptr.vmem [resolvable:$true] %s134_s5 }
  0x1a   :  { %s174_s7 = scalar_lea.vmem %s135_s5, 128  ;;  %p179_p9 = scmp.lt.s32.totalorder %s135_s5, %s135_s5 }
  0x1b   :  { %p175_p8 = scmp.ne.s32.totalorder %s135_s5, %s174_s7  ;;  %p180_p10 = scmp.lt.s32.totalorder %s174_s7, %s174_s7 }
  0x1c   :  { %v91_v36 = vld [vmem:[#allocation2] sm:$0xff]  ;;  %v92_v42 = vld [vmem:[#allocation2 + $0x8] sm:$0xff] }
  0x1d   :  { %p181_p11 = por %p180_p10, %p179_p9 }
  0x1f   :  { %p182_p12 = pnand %p181_p11, %p175_p8 }
  0x94   :  { %v61_v11 = vpop.permute.xlu0 %60 }
  0x95   :  { %vm65_vm1 = vcmp.eq.s32.totalorder %v247_v5, %v61_v11  ;;  %vm66_vm2 = vcmp.eq.s32.totalorder %v49_v6, %v61_v11  ;;  %vm67_vm3 = vcmp.eq.s32.totalorder %v50_v7, %v61_v11  ;;  %vm68_vm4 = vcmp.eq.s32.totalorder %v51_v10, %v61_v11 }
  0x96   :  { %v73_v13 = vsel %vm65_vm1, %v38_v8, 0.0  ;;  %v74_v14 = vsel %vm66_vm2, %v39_v9, 0.0  ;;  %v75_v20 = vsel %vm67_vm3, %v40_v12, 0.0  ;;  %v76_v23 = vsel %vm68_vm4, %v41_v15, 0.0 }
  0x97   :  { %v81_v16 = vadd.f32 %v74_v14, %v73_v13 }
  0x98   :  { %v64_v19 = vpop.permute.xlu0 %63 }
  0x99   :  { %vm69_vm5 = vcmp.eq.s32.totalorder %v247_v5, %v64_v19  ;;  %vm70_vm6 = vcmp.eq.s32.totalorder %v49_v6, %v64_v19  ;;  %v82_v21 = vadd.f32 %v81_v16, %v75_v20  ;;  %vm71_vm7 = vcmp.eq.s32.totalorder %v50_v7, %v64_v19 }
  0x9a   :  { %v77_v24 = vsel %vm69_vm5, %v42_v17, 0.0  ;;  %v78_v25 = vsel %vm70_vm6, %v43_v18, 0.0  ;;  %vm72_vm8 = vcmp.eq.s32.totalorder %v51_v10, %v64_v19  ;;  %v79_v29 = vsel %vm71_vm7, %v44_v22, 0.0 }
  0x9b   :  { %v83_v26 = vadd.f32 %v82_v21, %v76_v23  ;;  %v86_v28 = vadd.f32 %v78_v25, %v77_v24  ;;  %v80_v31 = vsel %vm72_vm8, %v45_v27, 0.0 }
  0x9d   :  { %84 = vadd.xlane.f32.xlu1 %v83_v26  ;;  %v87_v30 = vadd.f32 %v86_v28, %v79_v29 }
  0x9f   :  { %v88_v32 = vadd.f32 %v87_v30, %v80_v31 }
  0xa1   :  { %89 = vadd.xlane.f32.xlu1 %v88_v32 }
 0x12a   :  { %v85_v34 = vpop.xlane.xlu1 %84 }
 0x12b   :  { %v93_v35 = vsub.f32 0.0, %v85_v34 }
 0x12d   :  { %v97_v37 = vmul.f32 %v95_v33, %v93_v35 }
 0x12e   :  { %v90_v39 = vpop.xlane.xlu1 %89 }
 0x12f   :  { %v99_v40 = vadd.f32 %v97_v37, %v91_v36  ;;  %v94_v41 = vsub.f32 0.0, %v90_v39 }
 0x131   :  { %102 = vst.msk [vmem:[#allocation2] sm:$0xff] %vm35_vm0, %v99_v40  ;;  %v98_v43 = vmul.f32 %v96_v38, %v94_v41 }
 0x133   :  { %v100_v44 = vadd.f32 %v98_v43, %v92_v42 }
 0x135   :  { %103 = vst.msk [vmem:[#allocation2 + $0x8] sm:$0xff] %vm35_vm0, %v100_v44 }
 0x138   :  { %v106_v45 = vld [vmem:[#allocation2] sm:$0xff] }
 0x139   :  { %v108_v47 = vsel %vm35_vm0, %v106_v45, 0.0 }
 0x13c   :  { %v107_v46 = vld [vmem:[#allocation2 + $0x8] sm:$0xff] }
 0x13d   :  { %v109_v48 = vsel %vm35_vm0, %v107_v46, 0.0 }
 0x13e   :  { %v110_v49 = vadd.f32 %v109_v48, %v108_v47 }
 0x140   :  { %111 = vadd.xlane.f32.xlu0 %v110_v49 }
 0x1cd   :  { %v112_v50 = vpop.xlane.xlu0 %111 }
 0x1ce   :  { %v113_v51 = vrot.slane %v112_v50, 4 }
 0x1d0   :  { %v114_v52 = vadd.f32 %v113_v51, %v112_v50 }
 0x1d2   :  { %v115_v53 = vrot.slane %v114_v52, 2 }
 0x1d4   :  { %v116_v54 = vadd.f32 %v115_v53, %v114_v52 }
 0x1d6   :  { %v117_v55 = vrot.slane %v116_v54, 1 }
 0x1d8   :  { %v118_v56 = vadd.f32 %v117_v55, %v116_v54 }
 0x1da   :  { %143 = vpush %v118_v56 }
 0x20b   :  { %s144_s6 = spop %143 }
 0x20c   :  { %v125_v58 = vstv %s144_s6 }
 0x20d   :  { %v126_v59 = vsel %vm124_vm11, %v125_v58, 0.0 }
 0x20e   :  { %127 = vst [vmem:[#allocation6] sm:$0xff] %v126_v59 }
 0x20f   :  { %185 = shalt.err (!%p182_p12)
}
 0x210   :  { %s186_s10 = scalar_lea.hbm %s281_s3, 128 }
 0x211   :  { %p187_p13 = scmp.ne.s32.totalorder %s281_s3, %s186_s10  ;;  %p190_p0 = scmp.lt.u32.totalorder %s186_s10, %s281_s3 }
 0x213   :  { %p192_p1 = pnand %p190_p0, %p187_p13 }
 0x215   :  { %195 = shalt.err (!%p192_p1)
}
 0x216   :  { %137 = dma.vmem_to_hbm [thread:$0]  %s135_s5, 128, %s281_s3, [#allocation5]  }
 0x217   :  { %198 = dma.done.wait [#allocation5], 128  }
 0x218   :  { %199 = vsyncadd [#allocation5], 4294967168 }
 0x219   :  { %141 = vsyncpa [#allocation4], 1 }
 0x21a   :  { %142 = vsyncpa [#allocation5], 1 }

</bundles_post_ra>
